<compile_context>
chip_gen: v7x
topology: tpu7x:2x2x1
jax: 0.10.0
libtpu: 0.0.40
codegen_flags: <defaults>
</compile_context>

<pallas_src>
import functools

import jax
import jax.numpy as jnp
from jax.experimental import pallas as pl
from jax.experimental.pallas import tpu as pltpu

LANE = 128  # pad tasks up to one full lane-row (zero padding is inert here)


def _uw_loss_kernel(x_ref, out_ref):
    """Fused elementwise + lane reduction.

    x_ref  : VMEM ref, shape (2, LANE) f32.  Row 0 = task losses, row 1 = log_vars.
    out_ref: SMEM ref, shape (1, 1) f32 (the scalar total loss).
    """
    ls = x_ref[0:1, :]                    # (1, LANE) task losses
    lv = x_ref[1:2, :]                    # (1, LANE) log variances
    precision = jnp.exp(-lv)              # EUP transcendental (otherwise idle slot)
    contrib = precision * ls + lv         # VPU elementwise
    out_ref[0, 0] = jnp.sum(contrib)      # XLU cross-lane reduce -> SMEM scalar
    # Zero padding is mathematically inert: exp(-0)*0 + 0 == 0.


def _uw_forward(losses_vec, log_vars):
    """Pack to one lane-dense (2, LANE) slab and run the kernel."""
    n = losses_vec.shape[0]
    assert n <= LANE, "more tasks than one lane row; bump LANE"
    packed = jnp.pad(
        jnp.stack(
            [losses_vec.astype(jnp.float32), log_vars.astype(jnp.float32)]
        ),  # (2, n)
        ((0, 0), (0, LANE - n)),
    )  # (2, LANE), zero padded along lanes

    out = pl.pallas_call(
        _uw_loss_kernel,
        out_shape=jax.ShapeDtypeStruct((1, 1), jnp.float32),
        in_specs=[pl.BlockSpec(memory_space=pltpu.MemorySpace.VMEM)],
        out_specs=pl.BlockSpec(memory_space=pltpu.MemorySpace.SMEM),
    )(packed)
    return out[0, 0]


@jax.custom_vjp
def _uw_loss(losses_vec, log_vars):
    return _uw_forward(losses_vec, log_vars)


def _uw_loss_fwd(losses_vec, log_vars):
    total = _uw_forward(losses_vec, log_vars)
    return total, (losses_vec, log_vars)


def _uw_loss_bwd(res, g):
    losses_vec, log_vars = res
    precision = jnp.exp(-log_vars)
    d_losses = g * precision                       # d/dloss_i  = exp(-lv_i)
    d_logvars = g * (1.0 - precision * losses_vec)  # d/dlv_i   = 1 - exp(-lv_i)*loss_i
    return d_losses, d_logvars


_uw_loss.defvjp(_uw_loss_fwd, _uw_loss_bwd)


@jax.jit
def uncertainty_weighted_loss(losses_dict, log_vars):
    """JAX wrapper reproducing UncertainlyweightedLoss.forward.

    Args:
      losses_dict: dict {task_name: scalar loss} (insertion order = task order,
                   matching iteration over `losses.values()` in PyTorch).
      log_vars:    f32 array of shape (num_tasks,)  (the learnable parameter).
    Returns:
      scalar f32 total loss.
    """
    losses_vec = jnp.stack(
        [jnp.asarray(v, dtype=jnp.float32) for v in losses_dict.values()]
    )  # (n,)
    return _uw_loss(losses_vec, jnp.asarray(log_vars, dtype=jnp.float32))


if __name__ == "__main__":
    # Synthetic setup matching the module's __init__:
    reg_list = ["task_a", "task_b", "task_c", "task_d"]
    num_tasks = len(reg_list)

    # nn.Parameter(torch.zeros(len(reg_list))) -> deterministic zeros init.
    log_vars = jnp.zeros((num_tasks,), dtype=jnp.float32)

    # Deterministic example per-task scalar losses.
    key = jax.random.PRNGKey(0)
    raw = jax.random.uniform(key, (num_tasks,), dtype=jnp.float32) * 2.0
    losses = {name: raw[i] for i, name in enumerate(reg_list)}

    total = uncertainty_weighted_loss(losses, log_vars)
    total = jax.block_until_ready(total)

    # Forward reference check in plain JAX.
    ref = jnp.sum(jnp.exp(-log_vars) * raw + log_vars)
    assert jnp.allclose(total, ref, rtol=1e-6, atol=1e-6), (total, ref)

    # Gradient check (log_vars is trainable in the PyTorch module).
    grad_lv = jax.grad(lambda lv: _uw_loss(raw, lv))(log_vars)
    grad_lv = jax.block_until_ready(grad_lv)
    ref_grad_lv = 1.0 - jnp.exp(-log_vars) * raw
    assert jnp.allclose(grad_lv, ref_grad_lv, rtol=1e-6, atol=1e-6), (
        grad_lv,
        ref_grad_lv,
    )

    print("KERNEL_OK")
</pallas_src>

<mosaic_0001>
module attributes {stable_mosaic.version = 11 : i64} {
  func.func @_uw_loss_kernel(%arg0: memref<2x128xf32, #tpu.memory_space<vmem>>, %arg1: memref<1x1xf32, #tpu.memory_space<smem>>) attributes {dimension_semantics = [], scalar_prefetch = 0 : i64, scratch_operands = 0 : i64, tpu.core_type = #tpu.core_type<tc>} {
    %c0 = arith.constant 0 : index
    %c0_0 = arith.constant 0 : index
    %0 = vector.load %arg0[%c0, %c0_0] : memref<2x128xf32, #tpu.memory_space<vmem>>, vector<1x128xf32>
    %c1 = arith.constant 1 : index
    %c0_1 = arith.constant 0 : index
    %1 = vector.load %arg0[%c1, %c0_1] : memref<2x128xf32, #tpu.memory_space<vmem>>, vector<1x128xf32>
    %cst = arith.constant 0.000000e+00 : f32
    %2 = vector.broadcast %cst : f32 to vector<1x128xf32>
    %3 = arith.subf %2, %1 : vector<1x128xf32>
    %4 = math.exp %3 : vector<1x128xf32>
    %5 = arith.mulf %4, %0 : vector<1x128xf32>
    %6 = arith.addf %5, %1 : vector<1x128xf32>
    %7 = vector.shape_cast %6 : vector<1x128xf32> to vector<1x1x128xf32>
    %cst_2 = arith.constant dense<0.000000e+00> : vector<1xf32>
    %8 = vector.multi_reduction <add>, %7, %cst_2 [1, 2] : vector<1x1x128xf32> to vector<1xf32>
    %9 = vector.shape_cast %8 : vector<1xf32> to vector<1x1x1xf32>
    %10 = vector.extract %9[0, 0, 0] : f32 from vector<1x1x1xf32>
    %c0_3 = arith.constant 0 : index
    %c0_4 = arith.constant 0 : index
    %11 = memref.load %arg1[%c0_3, %c0_4] : memref<1x1xf32, #tpu.memory_space<smem>>
    memref.store %10, %arg1[%c0_3, %c0_4] : memref<1x1xf32, #tpu.memory_space<smem>>
    return
  }
}

</mosaic_0001>

<bundles_post_ra>
// kernel: uncertainty_weighted_loss.1
= control target key start
LH: loop header
LB: loop body
LE: loop exit
PB: predicated region body
PF: predicated region fallthrough
CT: control target
= control target key end

     0   :  { %s88_s0 = inlined_call_operand.vmem [shape: f32[2,128], index: 0, kind: input, shape index: {}]   ;;  %s89_s1 = inlined_call_operand.hbm [shape: f32[1,1], index: 1, kind: output, shape index: {}]  }
   0x1   :  { %v10_v0 = vld [vmem:[%s88_s0 + $0x1] sm:$0x1] }
   0x2   :  { %v11_v1 = vsub.f32 0.0, %v10_v0 }
   0x3   :  { %6 = vsyncpa [#allocation3], 0  ;;  %v9_v3 = vld [vmem:[%s88_s0] sm:$0x1]  ;;  %vm16_vm0 = vcmask 1040384   ;;  %s47_s0 = scalar_lea.hbm %s89_s1, 16 }
   0x4   :  { %v12_v2 = vmul.f32 1.442695, %v11_v1  ;;  %p48_p0 = scmp.ne.s32.totalorder %s89_s1, %s47_s0  ;;  %p51_p1 = scmp.lt.u32.totalorder %s47_s0, %s89_s1 }
   0x6   :  { %45 = vpow2.f32 %v12_v2  ;;  %p53_p2 = pnand %p51_p1, %p48_p0 }
  0x10   :  { %v46_v4 = vpop.eup %45 }
  0x11   :  { %v14_v5 = vmul.f32 %v46_v4, %v9_v3 }
  0x13   :  { %v15_v6 = vadd.f32 %v14_v5, %v10_v0 }
  0x15   :  { %v17_v7 = vsel %vm16_vm0, %v15_v6, 0.0 }
  0x16   :  { %18 = vadd.xlane.f32.xlu0 %v17_v7 }
  0xa3   :  { %v19_v8 = vpop.xlane.xlu0 %18 }
  0xa4   :  { %v20_v9 = vrot.slane %v19_v8, 4 }
  0xa6   :  { %v21_v10 = vadd.f32 %v20_v9, %v19_v8 }
  0xa8   :  { %v22_v11 = vrot.slane %v21_v10, 2 }
  0xaa   :  { %v23_v12 = vadd.f32 %v22_v11, %v21_v10 }
  0xac   :  { %v24_v13 = vrot.slane %v23_v12, 1 }
  0xae   :  { %v25_v14 = vadd.f32 %v24_v13, %v23_v12 }
  0xb0   :  { %42 = vpush %v25_v14 }
  0xe1   :  { %s43_s10 = spop %42 }
  0xe2   :  { %28 = sst [smem:[#allocation2]] %s43_s10 }
  0xe3   :  { %56 = shalt.err (!%p53_p2)
}
  0xe4   :  { %s59_s17 = smov [#allocation2]  }
  0xe5   :  { %36 = dma.smem_to_hbm %s59_s17, 16, %s89_s1, [#allocation3]  }
  0xe6   :  { %57 = dma.done.wait [#allocation3], 16  }
  0xe7   :  { %58 = vsyncadd [#allocation3], 4294967280 }
  0xe8   :  { %40 = sfence }
  0xe9   :  { %41 = vsyncpa [#allocation3], 1 }

</bundles_post_ra>
